<compile_context>
chip_gen: v6e
topology: v6e:2x2x1
jax: 0.10.0
libtpu: 0.0.40
codegen_flags: <defaults>
</compile_context>

<pallas_src>
import math

import jax
import jax.numpy as jnp
from jax.experimental import pallas as pl
from jax.experimental.pallas import tpu as pltpu

KERNEL_SET = (2, 3, 6, 7)
KMAX = KERNEL_SET[-1]


def _di_band_kernel(x0_ref, x1_ref, w0_ref, w1_ref, b_ref, o_ref):
    # x0/x1: (R, Tt*Cin) current / next input time tile (lane-dense)
    # w0/w1: (Tt*Cin, Tt*Ctot) resident band weights; b: (1, Tt*Ctot) f32
    acc = jnp.dot(x0_ref[...], w0_ref[...], preferred_element_type=jnp.float32)
    acc = acc + jnp.dot(x1_ref[...], w1_ref[...],
                        preferred_element_type=jnp.float32)
    o_ref[...] = (acc + b_ref[...]).astype(o_ref.dtype)


def _choose_time_tile(dil, cin, ctot):
    """Smallest Tt >= dil*(KMAX-1) with Tt*cin % 128 == 0, Tt*ctot % 128 == 0
    and Tt*ctot >= 256 (lane-dense x/out tiles, full MXU column fill)."""
    halo = dil * (KMAX - 1)
    start = max(halo, 1)
    for tt in range(start, start + 129):
        if (tt * cin) % 128 == 0 and (tt * ctot) % 128 == 0 and tt * ctot >= 256:
            return tt
    return -(-start // 128) * 128   # multiple of 128 always satisfies both


def _pick_row_tile(rows_total, sublane, r_max=512):
    """Largest row tile <= r_max; split only when rows exceed r_max (the grid
    is a serial loop on single-TC chips), sized to minimize padding waste."""
    n_steps = max(1, -(-rows_total // r_max))
    r = -(-rows_total // n_steps)
    return max(sublane, -(-r // sublane) * sublane)


def _pack_band_weights(weights_oihw, biases, tt, dil, compute_dtype):
    """Pack the 4 dilated conv weights into two band matrices + fused bias.

    out[:, q*tt + u, :] = sum_s x[:, q*tt + s, :] @ W0[s,u]
                        + sum_s x[:, (q+1)*tt + s, :] @ W1[s,u] + bias
    where W{0,1}[s, u] = w7[j] when s (+tt) == u + j*dil, and w7[j] is the
    fused per-tap (cin, ctot) weight (zeros where a shorter kernel has no tap,
    which reproduces the crop-to-widest-kernel semantics).
    """
    cout_b, cin = weights_oihw[0].shape[0], weights_oihw[0].shape[1]
    ctot = len(KERNEL_SET) * cout_b

    w7 = jnp.zeros((KMAX, cin, ctot), jnp.float32)
    bias_parts = []
    for idx, (k, w, b) in enumerate(zip(KERNEL_SET, weights_oihw, biases)):
        off = KMAX - k   # this branch only uses taps j = off .. KMAX-1
        w_t = jnp.transpose(w[:, :, 0, :].astype(jnp.float32), (2, 1, 0))
        w7 = w7.at[off:, :, idx * cout_b:(idx + 1) * cout_b].set(w_t)
        bias_parts.append(b.astype(jnp.float32).reshape(-1))
    bias_cat = jnp.concatenate(bias_parts)                         # (ctot,)

    w0 = jnp.zeros((tt, cin, tt, ctot), jnp.float32)
    w1 = jnp.zeros((tt, cin, tt, ctot), jnp.float32)
    for u in range(tt):
        for j in range(KMAX):
            s = u + j * dil            # 0 <= s < 2*tt since tt >= dil*(KMAX-1)
            if s < tt:
                w0 = w0.at[s, :, u, :].set(w7[j])
            else:
                w1 = w1.at[s - tt, :, u, :].set(w7[j])
    w0 = w0.reshape(tt * cin, tt * ctot).astype(compute_dtype)
    w1 = w1.reshape(tt * cin, tt * ctot).astype(compute_dtype)
    bias_big = jnp.tile(bias_cat, tt)[None, :]                     # f32
    return w0, w1, bias_big


def dilated_inception_pallas(x_nchw, weights_oihw, biases, dilation_factor=2,
                             compute_dtype=None):
    """x_nchw: (B, Cin, N, T); weights_oihw[i]: (cout_b, Cin, 1, k_i); biases[i]: (cout_b,)."""
    B, Cin, N, T = x_nchw.shape
    dil = int(dilation_factor)
    t_last = T - dil * (KMAX - 1)
    if t_last <= 0:
        raise ValueError(f"sequence length {T} too short for dilation {dil}")
    cout_b = weights_oihw[0].shape[0]
    ctot = len(KERNEL_SET) * cout_b
    out_dtype = x_nchw.dtype
    if compute_dtype is None:
        compute_dtype = x_nchw.dtype

    tt = _choose_time_tile(dil, Cin, ctot)
    n_q = -(-t_last // tt)               # output time tiles
    t_out_pad = n_q * tt
    T_pad = (n_q + 1) * tt               # one extra input tile for the q+1 block

    w0, w1, bias_big = _pack_band_weights(weights_oihw, biases, tt, dil,
                                          compute_dtype)

    # NCHW -> channels-last rows, time zero-padded, flattened lane-dense.
    rows_total = B * N
    x_rows = jnp.transpose(x_nchw, (0, 2, 3, 1))                   # (B,N,T,Cin)
    x_rows = jnp.pad(x_rows, ((0, 0), (0, 0), (0, T_pad - T), (0, 0)))
    x_rows = x_rows.reshape(rows_total, T_pad * Cin).astype(compute_dtype)

    sublane = 16 if jnp.dtype(compute_dtype).itemsize == 2 else 8
    R = _pick_row_tile(rows_total, sublane)
    rows_pad = -(-rows_total // R) * R
    if rows_pad != rows_total:
        # TODO(synk): a clamped last-row-tile index_map would avoid this pad copy.
        x_rows = jnp.pad(x_rows, ((0, rows_pad - rows_total), (0, 0)))

    grid = (rows_pad // R, n_q)
    x_itm = jnp.dtype(compute_dtype).itemsize
    cost = pl.CostEstimate(
        flops=4 * rows_pad * n_q * (tt * Cin) * (tt * ctot),
        transcendentals=0,
        bytes_accessed=(2 * rows_pad * n_q * tt * Cin * x_itm
                        + (w0.size + w1.size) * x_itm + bias_big.size * 4
                        + rows_pad * t_out_pad * ctot
                        * jnp.dtype(out_dtype).itemsize),
    )

    out = pl.pallas_call(
        _di_band_kernel,
        out_shape=jax.ShapeDtypeStruct((rows_pad, t_out_pad * ctot), out_dtype),
        grid=grid,
        in_specs=[
            pl.BlockSpec((R, tt * Cin), lambda i, q: (i, q)),          # x tile q
            pl.BlockSpec((R, tt * Cin), lambda i, q: (i, q + 1)),      # x tile q+1
            pl.BlockSpec((tt * Cin, tt * ctot), lambda i, q: (0, 0)),  # W0 resident
            pl.BlockSpec((tt * Cin, tt * ctot), lambda i, q: (0, 0)),  # W1 resident
            pl.BlockSpec((1, tt * ctot), lambda i, q: (0, 0)),         # bias resident
        ],
        out_specs=pl.BlockSpec((R, tt * ctot), lambda i, q: (i, q)),
        compiler_params=pltpu.CompilerParams(
            dimension_semantics=("parallel", "parallel")),
        cost_estimate=cost,
    )(x_rows, x_rows, w0, w1, bias_big)

    # Crop padding and return PyTorch NCHW: (B, Ctot, N, t_last).
    out = out[:rows_total, :t_last * ctot]
    return out.reshape(B, N, t_last, ctot).transpose(0, 3, 1, 2)


def dilated_inception_ref(x_nchw, weights_oihw, biases, dilation_factor=2):
    """Pure-JAX reference mirroring the PyTorch module (NCHW dilated convs)."""
    outs = []
    for w, b in zip(weights_oihw, biases):
        y = jax.lax.conv_general_dilated(
            x_nchw, w, window_strides=(1, 1), padding="VALID",
            rhs_dilation=(1, dilation_factor),
            dimension_numbers=("NCHW", "OIHW", "NCHW"))
        outs.append(y + b.reshape(1, -1, 1, 1))
    t_last = outs[-1].shape[-1]
    return jnp.concatenate([o[..., -t_last:] for o in outs], axis=1)


if __name__ == "__main__":
    # Small shapes consistent with the module's forward (NCHW = B, Cin, N, T).
    B, Cin, N, T = 2, 8, 16, 32
    Cout, dil = 16, 2
    cout_b = Cout // len(KERNEL_SET)

    key = jax.random.PRNGKey(0)
    kx, key = jax.random.split(key)
    x = jax.random.normal(kx, (B, Cin, N, T), dtype=jnp.float32)

    weights, biases = [], []
    for kern in KERNEL_SET:
        kw, kb, key = jax.random.split(key, 3)
        bound = 1.0 / math.sqrt(Cin * 1 * kern)
        weights.append(jax.random.uniform(kw, (cout_b, Cin, 1, kern),
                                          jnp.float32, -bound, bound))
        biases.append(jax.random.uniform(kb, (cout_b,), jnp.float32,
                                         -bound, bound))

    fwd = jax.jit(dilated_inception_pallas,
                  static_argnames=("dilation_factor", "compute_dtype"))

    out = jax.block_until_ready(fwd(x, weights, biases, dilation_factor=dil))
    ref = dilated_inception_ref(x, weights, biases, dil)
    t_last = T - dil * (KMAX - 1)
    assert out.shape == ref.shape == (B, Cout, N, t_last), (out.shape, ref.shape)
    assert jnp.allclose(out, ref, atol=1e-3, rtol=1e-3), float(
        jnp.max(jnp.abs(out - ref)))

    # bf16 compute path (v6e/v7x MXU fast path), f32 accumulation.
    out_bf16 = jax.block_until_ready(
        fwd(x, weights, biases, dilation_factor=dil,
            compute_dtype=jnp.bfloat16))
    assert out_bf16.shape == ref.shape
    assert jnp.allclose(out_bf16, ref, atol=5e-2, rtol=5e-2), float(
        jnp.max(jnp.abs(out_bf16 - ref)))

    print("KERNEL_OK")
</pallas_src>

<mosaic_0001>
module attributes {stable_mosaic.version = 11 : i64} {
  func.func @_di_band_kernel(%arg0: i32, %arg1: i32, %arg2: memref<32x128xf32, #tpu.memory_space<vmem>>, %arg3: memref<32x128xf32, #tpu.memory_space<vmem>>, %arg4: memref<128x256xf32, #tpu.memory_space<vmem>>, %arg5: memref<128x256xf32, #tpu.memory_space<vmem>>, %arg6: memref<1x256xf32, #tpu.memory_space<vmem>>, %arg7: memref<32x256xf32, #tpu.memory_space<vmem>>) attributes {dimension_semantics = [#tpu.dimension_semantics<parallel>, #tpu.dimension_semantics<parallel>], iteration_bounds = array<i64: 1, 2>, scalar_prefetch = 0 : i64, scratch_operands = 0 : i64, tpu.core_type = #tpu.core_type<tc>, window_params = [{transform_indices = @transform_0, window_bounds = array<i64: 32, 128>}, {transform_indices = @transform_1, window_bounds = array<i64: 32, 128>}, {pipeline_mode = #tpu.pipeline_mode<synchronous>, transform_indices = @transform_2, window_bounds = array<i64: 128, 256>}, {pipeline_mode = #tpu.pipeline_mode<synchronous>, transform_indices = @transform_3, window_bounds = array<i64: 128, 256>}, {pipeline_mode = #tpu.pipeline_mode<synchronous>, transform_indices = @transform_4, window_bounds = array<i64: 1, 256>}, {transform_indices = @transform_5, window_bounds = array<i64: 32, 256>}]} {
    %c0 = arith.constant 0 : index
    %c0_0 = arith.constant 0 : index
    %0 = vector.load %arg2[%c0, %c0_0] : memref<32x128xf32, #tpu.memory_space<vmem>>, vector<32x128xf32>
    %c0_1 = arith.constant 0 : index
    %c0_2 = arith.constant 0 : index
    %1 = vector.load %arg4[%c0_1, %c0_2] : memref<128x256xf32, #tpu.memory_space<vmem>>, vector<128x256xf32>
    %cst = arith.constant dense<0.000000e+00> : vector<32x256xf32>
    %2 = tpu.matmul %0, %1, %cst {dimension_numbers = #tpu.dot_dimension_numbers<[1], [0], [0], [1], [0, 0, 1, 1], [], []>} : vector<32x128xf32>, vector<128x256xf32>, vector<32x256xf32> -> vector<32x256xf32>
    %c0_3 = arith.constant 0 : index
    %c0_4 = arith.constant 0 : index
    %3 = vector.load %arg3[%c0_3, %c0_4] : memref<32x128xf32, #tpu.memory_space<vmem>>, vector<32x128xf32>
    %c0_5 = arith.constant 0 : index
    %c0_6 = arith.constant 0 : index
    %4 = vector.load %arg5[%c0_5, %c0_6] : memref<128x256xf32, #tpu.memory_space<vmem>>, vector<128x256xf32>
    %cst_7 = arith.constant dense<0.000000e+00> : vector<32x256xf32>
    %5 = tpu.matmul %3, %4, %cst_7 {dimension_numbers = #tpu.dot_dimension_numbers<[1], [0], [0], [1], [0, 0, 1, 1], [], []>} : vector<32x128xf32>, vector<128x256xf32>, vector<32x256xf32> -> vector<32x256xf32>
    %6 = arith.addf %2, %5 : vector<32x256xf32>
    %c0_8 = arith.constant 0 : index
    %c0_9 = arith.constant 0 : index
    %7 = vector.load %arg6[%c0_8, %c0_9] : memref<1x256xf32, #tpu.memory_space<vmem>>, vector<1x256xf32>
    %8 = vector.broadcast %7 : vector<1x256xf32> to vector<32x256xf32>
    %9 = arith.addf %6, %8 : vector<32x256xf32>
    %c0_10 = arith.constant 0 : index
    %c0_11 = arith.constant 0 : index
    %10 = vector.load %arg7[%c0_10, %c0_11] : memref<32x256xf32, #tpu.memory_space<vmem>>, vector<32x256xf32>
    tpu.vector_store %arg7[%c0_10, %c0_11], %9 {strides = array<i32>} : memref<32x256xf32, #tpu.memory_space<vmem>>, vector<32x256xf32>,
    return
  }
  func.func @transform_0(%arg0: i32, %arg1: i32) -> (i32, i32) {
    %c0_i32 = arith.constant 0 : i32
    return %arg0, %arg1 : i32, i32
  }
  func.func @transform_1(%arg0: i32, %arg1: i32) -> (i32, i32) {
    %c1_i32 = arith.constant 1 : i32
    %0 = arith.addi %arg1, %c1_i32 : i32
    %c0_i32 = arith.constant 0 : i32
    return %arg0, %0 : i32, i32
  }
  func.func @transform_2(%arg0: i32, %arg1: i32) -> (i32, i32) {
    %c0_i32 = arith.constant 0 : i32
    %c0_i32_0 = arith.constant 0 : i32
    %c0_i32_1 = arith.constant 0 : i32
    return %c0_i32, %c0_i32_0 : i32, i32
  }
  func.func @transform_3(%arg0: i32, %arg1: i32) -> (i32, i32) {
    %c0_i32 = arith.constant 0 : i32
    %c0_i32_0 = arith.constant 0 : i32
    %c0_i32_1 = arith.constant 0 : i32
    return %c0_i32, %c0_i32_0 : i32, i32
  }
  func.func @transform_4(%arg0: i32, %arg1: i32) -> (i32, i32) {
    %c0_i32 = arith.constant 0 : i32
    %c0_i32_0 = arith.constant 0 : i32
    %c0_i32_1 = arith.constant 0 : i32
    return %c0_i32, %c0_i32_0 : i32, i32
  }
  func.func @transform_5(%arg0: i32, %arg1: i32) -> (i32, i32) {
    %c0_i32 = arith.constant 0 : i32
    return %arg0, %arg1 : i32, i32
  }
}

</mosaic_0001>

<bundles_post_ra>
// kernel: tile.8
= control target key start
LH: loop header
LB: loop body
LE: loop exit
PB: predicated region body
PF: predicated region fallthrough
CT: control target
= control target key end

     0   :  { %s28_s0 = inlined_call_operand.vmem [shape: f32[16], index: 0, kind: input, shape index: {}]   ;;  %s29_s1 = inlined_call_operand.vmem [shape: f32[16,16], index: 1, kind: output, shape index: {}]  }
   0x1   :  { %v4_v0 = vld [vmem:[%s28_s0] ss:$0 sm:$0xff] }
   0x2   :  { %5 = vst [vmem:[%s29_s1] sm:$0xff] %v4_v0  ;;  %8 = vst [vmem:[%s29_s1 + $0x8] sm:$0xff] %v4_v0 }

// kernel: tile.9
= control target key start
LH: loop header
LB: loop body
LE: loop exit
PB: predicated region body
PF: predicated region fallthrough
CT: control target
= control target key end

     0   :  { %s7_s6 = smov 3  ;;  %s21_s9 = smov 3  ;;  %vm4_vm0 = vcmask 130048   ;;  %vm11_vm1 = vcmask 1048448   ;;  %vm18_vm2 = vcmask 917248   ;;  %vm25_vm3 = vcmask 786048   ;;  %s131_s0 = inlined_call_operand.vmem [shape: f32[16,16], index: 0, kind: input, shape index: {}]   ;;  %s132_s1 = inlined_call_operand.vmem [shape: f32[1,256], index: 1, kind: output, shape index: {}]  }
   0x1   :  { %v69_v0 = vld [vmem:[%s131_s0 + $0x7] ss:$8 sm:%s7_s6]   ;;  %s84_s10 = smov 112   ;;  %v71_v1 = vld [vmem:[%s131_s0 + $0x5] ss:$8 sm:%s21_s9]   ;;  %s14_s13 = smov 3 }
   0x2   :  { %9 = vrot.lane.b32.xlu0 %v69_v0, %s84_s10  ;;  %s85_s14 = smov 80   ;;  %v70_v2 = vld [vmem:[%s131_s0 + $0x6] ss:$8 sm:%s14_s13]   ;;  %s28_s17 = smov 3  ;;  %vm32_vm4 = vcmask 654848   ;;  %vm39_vm5 = vcmask 523648  }
   0x3   :  { %23 = vrot.lane.b32.xlu1 %v71_v1, %s85_s14  ;;  %v72_v3 = vld [vmem:[%s131_s0 + $0x4] ss:$8 sm:%s28_s17]   ;;  %s35_s20 = smov 3  ;;  %s42_s21 = smov 3  ;;  %vm46_vm6 = vcmask 392448   ;;  %vm53_vm7 = vcmask 261248  }
   0x4   :  { %s86_s22 = smov 96   ;;  %s87_s23 = smov 64   ;;  %v73_v4 = vld [vmem:[%s131_s0 + $0x3] ss:$8 sm:%s35_s20]   ;;  %v74_v5 = vld [vmem:[%s131_s0 + $0x2] ss:$8 sm:%s42_s21]  }
   0x5   :  { %s2_s26 = smov 3  ;;  %s49_s29 = smov 3 }
   0x6   :  { %16 = vrot.lane.b32.xlu0 %v70_v2, %s86_s22  ;;  %v3_v6 = vld [vmem:[%s131_s0] ss:$8 sm:%s2_s26]   ;;  %s88_s3 = smov 48   ;;  %s89_s4 = smov 32  }
   0x7   :  { %30 = vrot.lane.b32.xlu1 %v72_v3, %s87_s23  ;;  %5 = vst.msk [vmem:[#allocation0] ss:$8 sm:$0x3] %vm4_vm0, %v3_v6   ;;  %v75_v7 = vld [vmem:[%s131_s0 + $0x1] ss:$8 sm:%s49_s29]   ;;  %s90_s0 = smov 16  }
   0xa   :  { %37 = vrot.lane.b32.xlu0 %v73_v4, %s88_s3 }
   0xb   :  { %44 = vrot.lane.b32.xlu1 %v74_v5, %s89_s4 }
   0xe   :  { %51 = vrot.lane.b32.xlu0 %v75_v7, %s90_s0 }
  0x74   :  { %v10_v8 = vpop.permute.xlu0 %9  }
  0x75   :  { %12 = vst.msk [vmem:[#allocation0] ss:$8 sm:$0x3] %vm11_vm1, %v10_v8   ;;  %v24_v9 = vpop.permute.xlu1 %23  }
  0x78   :  { %v17_v10 = vpop.permute.xlu0 %16  }
  0x79   :  { %19 = vst.msk [vmem:[#allocation0] ss:$8 sm:$0x3] %vm18_vm2, %v17_v10   ;;  %v31_v11 = vpop.permute.xlu1 %30  }
  0x7a   :  { %26 = vst.msk [vmem:[#allocation0] ss:$8 sm:$0x3] %vm25_vm3, %v24_v9  }
  0x7b   :  { %33 = vst.msk [vmem:[#allocation0] ss:$8 sm:$0x3] %vm32_vm4, %v31_v11  }
  0x7c   :  { %v38_v12 = vpop.permute.xlu0 %37  }
  0x7d   :  { %40 = vst.msk [vmem:[#allocation0] ss:$8 sm:$0x3] %vm39_vm5, %v38_v12   ;;  %v45_v13 = vpop.permute.xlu1 %44  }
  0x7e   :  { %47 = vst.msk [vmem:[#allocation0] ss:$8 sm:$0x3] %vm46_vm6, %v45_v13  }
  0x80   :  { %v52_v14 = vpop.permute.xlu0 %51  }
  0x81   :  { %54 = vst.msk [vmem:[#allocation0] ss:$8 sm:$0x3] %vm53_vm7, %v52_v14  }
  0x88   :  { %v59_v15 = vld [vmem:[#allocation0] sm:$0x1]  ;;  %v64_v16 = vld [vmem:[#allocation0 + $0x8] sm:$0x1] }
  0x89   :  { %62 = vst [vmem:[%s132_s1] sm:$0x1] %v59_v15  ;;  %76 = vst [vmem:[%s132_s1 + $0x1] sm:$0x1] %v64_v16 }

// kernel: dilated_inception_pallas.1
= control target key start
LH: loop header
LB: loop body
LE: loop exit
PB: predicated region body
PF: predicated region fallthrough
CT: control target
= control target key end

     0   :  { %s944_s18 = smov 0   ;;  %s946_s19 = smov 0   ;;  %s1280_s0 = inlined_call_operand.vmem [shape: f32[32,384], index: 0, kind: input, shape index: {}, may-alias: {0,1}]   ;;  %s1281_s1 = inlined_call_operand.vmem [shape: f32[32,384], index: 1, kind: input, shape index: {}, may-alias: {0,1}]   ;;  %s1282_s2 = inlined_call_operand.vmem [shape: f32[128,256], index: 2, kind: input, shape index: {}]   ;;  %s1283_s3 = inlined_call_operand.vmem [shape: f32[128,256], index: 3, kind: input, shape index: {}]   ;;  %s1284_s4 = inlined_call_operand.vmem [shape: f32[1,256], index: 4, kind: input, shape index: {}]   ;;  %s1285_s5 = inlined_call_operand.vmem [shape: f32[32,512], index: 5, kind: output, shape index: {}]  }
   0x1   :  { %s948_s20 = smov 0   ;;  %s950_s21 = smov 0  }
   0x2   :  { %s952_s22 = smov 0   ;;  %s954_s23 = smov 0  }
   0x3   :  { %s956_s24 = smov 0  }
   0x4 LB: > { %s778_s25 = sadd.s32 4294967295, %s911_s24   ;;  %s24_s26 = sadd.s32 1, %s907_s23  ;;  %s911_s24 = sphi %s956_s24, %s15_s24   ;;  %s907_s23 = sphi %s954_s23, %s1294_s23   ;;  %s903_s22 = sphi %s952_s22, %s1293_s22   ;;  %s899_s21 = sphi %s950_s21, %s1292_s21   ;;  %s895_s20 = sphi %s948_s20, %s1291_s20   ;;  %s891_s19 = sphi %s946_s19, %s1290_s19   ;;  %s887_s18 = sphi %s944_s18, %s1289_s18  }
   0x5   : > { %p25_p0 = scmp.ge.s32.totalorder %s24_s26, 2  ;;  %s36_s27 = sadd.s32 1, %s899_s21 }
   0x6   : > { %p43_p1 = scmp.ne.s32.totalorder %s899_s21, %s895_s20  ;;  %p44_p2 = scmp.eq.s32.totalorder %s911_s24, 0 }
   0x7   : > { %s985_s28 = scalar_select %p25_p0, 0, %s24_s26  }
   0x8   : > { %p990_p3 = por %p44_p2, %p43_p1  ;;  %s66_s30 = sadd.s32 1, %s891_s19 }
   0x9   : > { %s32_s6 = ssub.s32 %s907_s23, %s985_s28  ;;  %s60_s7 = sadd.s32 1, %s985_s28 }
   0xa   : > { %p34_p4 = scmp.eq.s32.totalorder %s32_s6, 0  ;;  %s62_s8 = ssub.s32 %s24_s26, %s60_s7 }
   0xb   : > { %p64_p5 = scmp.eq.s32.totalorder %s62_s8, 0  ;;  %p73_p6 = scmp.ne.s32.totalorder %s891_s19, %s887_s18 }
   0xc   : > { %s1001_s9 = scalar_select %p34_p4, %s899_s21, %s36_s27  }
   0xd   : > { %s1004_s10 = scalar_select %p64_p5, %s891_s19, %s66_s30  }
   0xe   : > { %p1006_p7 = por %p73_p6, %p44_p2  ;;  %p168_p8 = scmp.eq.s32.totalorder %s778_s25, 1 }
   0xf   : > { %p781_p10 = scmp.ge.s32.totalorder %s911_s24, 2 }
  0x10   : > { %p1013_p9 = por %p168_p8, %p43_p1 }
  0x11   : > { %199 = sbr.rel (%p781_p10) target bundleno = 34 (0x22), region = 28 }
  0x16   : > { %202 = sbr.rel (!%p990_p3) target bundleno = 28 (0x1c), region = 32  ;;  %s204_s13 = sand.u32 (%p990_p3), 1, %s899_s21  }
  0x17   : > { %s783_s14 = sshll.u32 (%p990_p3), %s907_s23, 3  ;;  %s782_s15 = sshll.u32 (%p990_p3), %s204_s13, 5 }
  0x18   : > { %s211_s25 = scalar_lea.vmem (%p990_p3), %s1280_s0, %s783_s14  ;;  %s206_s26 = scalar_lea.vmem (%p990_p3), [#allocation2], %s782_s15 }
  0x19   : > { %v246_v0 = vld [vmem:[%s211_s25] sm:$0xff] (%p990_p3)  ;;  %v248_v1 = vld [vmem:[%s211_s25 + $0x18] sm:$0xff] (%p990_p3)  ;;  %v250_v2 = vld [vmem:[%s211_s25 + $0x30] sm:$0xff] (%p990_p3) }
  0x1a   : > { %247 = vst [vmem:[%s206_s26] sm:$0xff] (%p990_p3), %v246_v0  ;;  %249 = vst [vmem:[%s206_s26 + $0x8] sm:$0xff] (%p990_p3), %v248_v1  ;;  %v252_v3 = vld [vmem:[%s211_s25 + $0x48] sm:$0xff] (%p990_p3) }
  0x1b   : > { %251 = vst [vmem:[%s206_s26 + $0x10] sm:$0xff] %v250_v2  ;;  %253 = vst [vmem:[%s206_s26 + $0x18] sm:$0xff] %v252_v3 }
  0x1c PF: > { %259 = sbr.rel (!%p1006_p7) target bundleno = 34 (0x22), region = 70  ;;  %s261_s27 = sand.u32 (%p1006_p7), 1, %s891_s19  }
  0x1d   : > { %s785_s29 = sshll.u32 (%p1006_p7), %s907_s23, 3  ;;  %s784_s30 = sshll.u32 (%p1006_p7), %s261_s27, 5 }
  0x1e   : > { %s710_s8 = scalar_lea.vmem (%p1006_p7), %s1281_s1, %s785_s29  ;;  %s263_s13 = scalar_lea.vmem (%p1006_p7), [#allocation3], %s784_s30 }
  0x1f   : > { %v786_v4 = vld [vmem:[%s710_s8 + $0x8] sm:$0xff] (%p1006_p7)  ;;  %v787_v5 = vld [vmem:[%s710_s8 + $0x20] sm:$0xff] (%p1006_p7)  ;;  %v788_v6 = vld [vmem:[%s710_s8 + $0x38] sm:$0xff] (%p1006_p7) }
  0x20   : > { %305 = vst [vmem:[%s263_s13] sm:$0xff] (%p1006_p7), %v786_v4  ;;  %307 = vst [vmem:[%s263_s13 + $0x8] sm:$0xff] (%p1006_p7), %v787_v5  ;;  %v789_v7 = vld [vmem:[%s710_s8 + $0x50] sm:$0xff] (%p1006_p7) }
  0x21   : > { %309 = vst [vmem:[%s263_s13 + $0x10] sm:$0xff] %v788_v6  ;;  %311 = vst [vmem:[%s263_s13 + $0x18] sm:$0xff] %v789_v7 }
  0x22 PF: > { %p790_p11 = scmp.ge.s32.totalorder %s911_s24, 1  ;;  %p316_p12 = scmp.lt.s32.totalorder %s911_s24, 3 }
  0x24   : > { %p317_p13 = pnand %p790_p11, %p316_p12 }
  0x25   : > { %s330_s15 = sand.u32 (!%p317_p13), 1, %s887_s18   ;;  %s323_s16 = sand.u32 (!%p317_p13), 1, %s895_s20  }
  0x26   : > { %320 = sbr.rel (%p317_p13) target bundleno = 298 (0x12a), region = 108  ;;  %s792_s14 = sshll.u32 (!%p317_p13), %s330_s15, 5 }
  0x27   : > { %s791_s17 = sshll.u32 (!%p317_p13), %s323_s16, 5  ;;  %s332_s30 = scalar_lea.vmem (!%p317_p13), [#allocation3], %s792_s14 }
  0x28   : > { %s325_s6 = scalar_lea.vmem (!%p317_p13), [#allocation2], %s791_s17  ;;  %s793_s7 = sshll.u32 (!%p317_p13), %s323_s16, 6 }
  0x29   : > { %s1235_s15 = scalar_lea.vmem (!%p317_p13), [#allocation4], %s793_s7 }
  0x2b   : > { %v436_v8 = vld [vmem:[%s1283_s3 + $0xf8] sm:$0xff]  ;;  %v435_v10 = vld [vmem:[%s1283_s3 + $0xf0] sm:$0xff]  ;;  %v434_v12 = vld [vmem:[%s1283_s3 + $0xe8] sm:$0xff]  ;;  %s799_s20 = sshll.u32 (%p1013_p9), %s903_s22, 4 }
  0x2c   : > { %v400_v9 = vld [vmem:[%s1282_s2 + $0xf8] sm:$0xff]  ;;  %437 = vmatprep.subr.mxu0 %v436_v8  ;;  %v399_v11 = vld [vmem:[%s1282_s2 + $0xf0] sm:$0xff]  ;;  %v398_v13 = vld [vmem:[%s1282_s2 + $0xe8] sm:$0xff]  ;;  %s655_s8 = scalar_lea.vmem (%p1013_p9), %s1285_s5, %s799_s20 }
  0x2d   : > { %526 = vmatprep.subr.mxu1 %v400_v9  ;;  %438 = vmatpush1.msra.mxu0 %v435_v10  ;;  %v433_v14 = vld [vmem:[%s1283_s3 + $0xe0] sm:$0xff]  ;;  %v432_v16 = vld [vmem:[%s1283_s3 + $0xd8] sm:$0xff]  ;;  %v431_v18 = vld [vmem:[%s1283_s3 + $0xd0] sm:$0xff]  ;;  %v913_v10 = vmov 0.0  }
  0x2e   : > { %527 = vmatpush1.msra.mxu1 %v399_v11  ;;  %v397_v15 = vld [vmem:[%s1282_s2 + $0xe0] sm:$0xff]  ;;  %439 = vmatprep.subr.mxu0 %v434_v12  ;;  %v396_v17 = vld [vmem:[%s1282_s2 + $0xd8] sm:$0xff]  ;;  %v395_v19 = vld [vmem:[%s1282_s2 + $0xd0] sm:$0xff] }
  0x2f   : > { %528 = vmatprep.subr.mxu1 %v398_v13  ;;  %440 = vmatpush1.msra.mxu0 %v433_v14  ;;  %v430_v20 = vld [vmem:[%s1283_s3 + $0xc8] sm:$0xff]  ;;  %v429_v22 = vld [vmem:[%s1283_s3 + $0xc0] sm:$0xff]  ;;  %v428_v24 = vld [vmem:[%s1283_s3 + $0xb8] sm:$0xff] }
  0x30   : > { %529 = vmatpush1.msra.mxu1 %v397_v15  ;;  %v394_v21 = vld [vmem:[%s1282_s2 + $0xc8] sm:$0xff]  ;;  %441 = vmatprep.subr.mxu0 %v432_v16  ;;  %v393_v23 = vld [vmem:[%s1282_s2 + $0xc0] sm:$0xff]  ;;  %v392_v25 = vld [vmem:[%s1282_s2 + $0xb8] sm:$0xff] }
  0x31   : > { %530 = vmatprep.subr.mxu1 %v396_v17  ;;  %442 = vmatpush1.msra.mxu0 %v431_v18  ;;  %v427_v26 = vld [vmem:[%s1283_s3 + $0xb0] sm:$0xff]  ;;  %v426_v28 = vld [vmem:[%s1283_s3 + $0xa8] sm:$0xff]  ;;  %v425_v30 = vld [vmem:[%s1283_s3 + $0xa0] sm:$0xff]  ;;  %v617_v17 = vlaneseq }
  0x32   : > { %531 = vmatpush1.msra.mxu1 %v395_v19  ;;  %443 = vmatprep.subr.mxu0 %v430_v20  ;;  %v391_v27 = vld [vmem:[%s1282_s2 + $0xb0] sm:$0xff]  ;;  %v390_v29 = vld [vmem:[%s1282_s2 + $0xa8] sm:$0xff]  ;;  %v389_v31 = vld [vmem:[%s1282_s2 + $0xa0] sm:$0xff] }
  0x33   : > { %532 = vmatprep.subr.mxu1 %v394_v21  ;;  %444 = vmatpush1.msra.mxu0 %v429_v22  ;;  %v424_v32 = vld [vmem:[%s1283_s3 + $0x98] sm:$0xff]  ;;  %v423_v34 = vld [vmem:[%s1283_s3 + $0x90] sm:$0xff]  ;;  %v422_v36 = vld [vmem:[%s1283_s3 + $0x88] sm:$0xff]  ;;  %v618_v18 = vshrl.u32 %v617_v17, 7 }
  0x34   : > { %533 = vmatpush1.msra.mxu1 %v393_v23  ;;  %445 = vmatprep.subr.mxu0 %v428_v24  ;;  %v388_v33 = vld [vmem:[%s1282_s2 + $0x98] sm:$0xff]  ;;  %v387_v35 = vld [vmem:[%s1282_s2 + $0x90] sm:$0xff]  ;;  %v386_v37 = vld [vmem:[%s1282_s2 + $0x88] sm:$0xff] }
  0x35   : > { %534 = vmatprep.subr.mxu1 %v392_v25  ;;  %446 = vmatpush1.msra.mxu0 %v427_v26  ;;  %v421_v38 = vld [vmem:[%s1283_s3 + $0x80] sm:$0xff]  ;;  %v420_v40 = vld [vmem:[%s1283_s3 + $0x78] sm:$0xff]  ;;  %v419_v42 = vld [vmem:[%s1283_s3 + $0x70] sm:$0xff]  ;;  %v619_v19 = vsub.s32 0, %v618_v18  ;;  %v623_v21 = vsub.s32 1, %v618_v18 }
  0x36   : > { %535 = vmatpush1.msra.mxu1 %v391_v27  ;;  %447 = vmatprep.subr.mxu0 %v426_v28  ;;  %v385_v39 = vld [vmem:[%s1282_s2 + $0x80] sm:$0xff]  ;;  %v384_v41 = vld [vmem:[%s1282_s2 + $0x78] sm:$0xff]  ;;  %v383_v43 = vld [vmem:[%s1282_s2 + $0x70] sm:$0xff] }
  0x37   : > { %536 = vmatprep.subr.mxu1 %v390_v29  ;;  %448 = vmatpush1.msra.mxu0 %v425_v30  ;;  %v418_v44 = vld [vmem:[%s1283_s3 + $0x68] sm:$0xff]  ;;  %v417_v46 = vld [vmem:[%s1283_s3 + $0x60] sm:$0xff]  ;;  %v416_v48 = vld [vmem:[%s1283_s3 + $0x58] sm:$0xff] }
  0x38   : > { %537 = vmatpush1.msra.mxu1 %v389_v31  ;;  %449 = vmatprep.subr.mxu0 %v424_v32  ;;  %v382_v45 = vld [vmem:[%s1282_s2 + $0x68] sm:$0xff]  ;;  %v381_v47 = vld [vmem:[%s1282_s2 + $0x60] sm:$0xff]  ;;  %v380_v49 = vld [vmem:[%s1282_s2 + $0x58] sm:$0xff] }
  0x39   : > { %538 = vmatprep.subr.mxu1 %v388_v33  ;;  %450 = vmatpush1.msra.mxu0 %v423_v34  ;;  %v415_v50 = vld [vmem:[%s1283_s3 + $0x50] sm:$0xff]  ;;  %v414_v52 = vld [vmem:[%s1283_s3 + $0x48] sm:$0xff]  ;;  %v413_v54 = vld [vmem:[%s1283_s3 + $0x40] sm:$0xff] }
  0x3a   : > { %539 = vmatpush1.msra.mxu1 %v387_v35  ;;  %451 = vmatprep.subr.mxu0 %v422_v36  ;;  %v379_v51 = vld [vmem:[%s1282_s2 + $0x50] sm:$0xff]  ;;  %v378_v53 = vld [vmem:[%s1282_s2 + $0x48] sm:$0xff]  ;;  %v377_v55 = vld [vmem:[%s1282_s2 + $0x40] sm:$0xff] }
  0x3b   : > { %540 = vmatprep.subr.mxu1 %v386_v37  ;;  %452 = vmatpush1.msra.mxu0 %v421_v38  ;;  %v412_v56 = vld [vmem:[%s1283_s3 + $0x38] sm:$0xff]  ;;  %v411_v58 = vld [vmem:[%s1283_s3 + $0x30] sm:$0xff]  ;;  %v410_v60 = vld [vmem:[%s1283_s3 + $0x28] sm:$0xff] }
  0x3c   : > { %541 = vmatpush1.msra.mxu1 %v385_v39  ;;  %453 = vmatprep.subr.mxu0 %v420_v40  ;;  %v376_v57 = vld [vmem:[%s1282_s2 + $0x38] sm:$0xff]  ;;  %v375_v59 = vld [vmem:[%s1282_s2 + $0x30] sm:$0xff]  ;;  %v374_v61 = vld [vmem:[%s1282_s2 + $0x28] sm:$0xff] }
  0x3d   : > { %542 = vmatprep.subr.mxu1 %v384_v41  ;;  %454 = vmatpush1.msra.mxu0 %v419_v42  ;;  %v409_v62 = vld [vmem:[%s1283_s3 + $0x20] sm:$0xff]  ;;  %v408_v0 = vld [vmem:[%s1283_s3 + $0x18] sm:$0xff]  ;;  %v407_v2 = vld [vmem:[%s1283_s3 + $0x10] sm:$0xff] }
  0x3e   : > { %543 = vmatpush1.msra.mxu1 %v383_v43  ;;  %455 = vmatprep.subr.mxu0 %v418_v44  ;;  %v373_v63 = vld [vmem:[%s1282_s2 + $0x20] sm:$0xff]  ;;  %v372_v1 = vld [vmem:[%s1282_s2 + $0x18] sm:$0xff]  ;;  %v371_v3 = vld [vmem:[%s1282_s2 + $0x10] sm:$0xff] }
  0x3f   : > { %544 = vmatprep.subr.mxu1 %v382_v45  ;;  %456 = vmatpush1.msra.mxu0 %v417_v46  ;;  %v406_v4 = vld [vmem:[%s1283_s3 + $0x8] sm:$0xff]  ;;  %v405_v6 = vld [vmem:[%s1283_s3] sm:$0xff]  ;;  %v403_v13 = vld [vmem:[%s332_s30 + $0x10] sm:$0xff] }
  0x40   : > { %545 = vmatpush1.msra.mxu1 %v381_v47  ;;  %457 = vmatprep.subr.mxu0 %v416_v48  ;;  %v370_v5 = vld [vmem:[%s1282_s2 + $0x8] sm:$0xff]  ;;  %v369_v7 = vld [vmem:[%s1282_s2] sm:$0xff]  ;;  %v367_v14 = vld [vmem:[%s325_s6 + $0x10] sm:$0xff] }
  0x41   : > { %546 = vmatprep.subr.mxu1 %v380_v49  ;;  %458 = vmatpush1.msra.mxu0 %v415_v50  ;;  %v401_v8 = vld [vmem:[%s332_s30] sm:$0xff]  ;;  %v402_v11 = vld [vmem:[%s332_s30 + $0x8] sm:$0xff]  ;;  %v404_v15 = vld [vmem:[%s332_s30 + $0x18] sm:$0xff] }
  0x42   : > { %547 = vmatpush1.msra.mxu1 %v379_v51  ;;  %459 = vmatprep.subr.mxu0 %v414_v52  ;;  %v365_v9 = vld [vmem:[%s325_s6] sm:$0xff]  ;;  %v366_v12 = vld [vmem:[%s325_s6 + $0x8] sm:$0xff]  ;;  %v368_v16 = vld [vmem:[%s325_s6 + $0x18] sm:$0xff] }
  0x43   : > { %548 = vmatprep.subr.mxu1 %v378_v53  ;;  %460 = vmatpush1.msra.mxu0 %v413_v54  ;;  %v615_v20 = vld [vmem:[%s1284_s4] sm:$0x3] }
  0x44   : > { %549 = vmatpush1.msra.mxu1 %v377_v55  ;;  %461 = vmatprep.subr.mxu0 %v412_v56  ;;  %v620_v22 = vrot.slane %v615_v20, %v619_v19  ;;  %v624_v26 = vrot.slane %v615_v20, %v623_v21 }
  0x45   : > { %550 = vmatprep.subr.mxu1 %v376_v57  ;;  %462 = vmatpush1.msra.mxu0 %v411_v58 }
  0x46   : > { %551 = vmatpush1.msra.mxu1 %v375_v59  ;;  %463 = vmatprep.subr.mxu0 %v410_v60 }
  0x47   : > { %552 = vmatprep.subr.mxu1 %v374_v61  ;;  %464 = vmatpush1.msra.mxu0 %v409_v62 }
  0x48   : > { %553 = vmatpush1.msra.mxu1 %v373_v63  ;;  %465 = vmatprep.subr.mxu0 %v408_v0 }
  0x49   : > { %554 = vmatprep.subr.mxu1 %v372_v1  ;;  %466 = vmatpush1.msra.mxu0 %v407_v2 }
  0x4a   : > { %555 = vmatpush1.msra.mxu1 %v371_v3  ;;  %467 = vmatprep.subr.mxu0 %v406_v4 }
  0x4b   : > { %556 = vmatprep.subr.mxu1 %v370_v5  ;;  %468 = vmatpush1.msra.mxu0 %v405_v6 }
  0x4c   : > { %501 = vmatprep.mubr.f32.mxu0 %v913_v10  ;;  %557 = vmatpush1.msra.mxu1 %v369_v7 }
  0x4d   : > { %590 = vmatprep.mubr.f32.mxu1 %v913_v10  ;;  %502 = vmatmul.mubr.f32.vlgmr.msra.gmra.mxu0 %v401_v8 }
  0x4e   : > { %591 = vmatmul.mubr.f32.vlgmr.msra.gmra.mxu1 %v365_v9  ;;  %507 = vmatprep.mubr.f32.mxu0 %v913_v10 }
  0x4f   : > { %596 = vmatprep.mubr.f32.mxu1 %v913_v10 }
  0x51   : > { %508 = vmatmul.mubr.f32.gmra.mxu0 %v402_v11 }
  0x52   : > { %597 = vmatmul.mubr.f32.gmra.mxu1 %v366_v12  ;;  %513 = vmatprep.mubr.f32.mxu0 %v913_v10 }
  0x53   : > { %602 = vmatprep.mubr.f32.mxu1 %v913_v10 }
  0x55   : > { %514 = vmatmul.mubr.f32.gmra.mxu0 %v403_v13 }
  0x56   : > { %603 = vmatmul.mubr.f32.gmra.mxu1 %v367_v14  ;;  %519 = vmatprep.mubr.f32.mxu0 %v913_v10 }
  0x57   : > { %608 = vmatprep.mubr.f32.mxu1 %v913_v10 }
  0x59   : > { %520 = vmatmul.mubr.f32.gmra.mxu0 %v404_v15 }
  0x5a   : > { %609 = vmatmul.mubr.f32.gmra.mxu1 %v368_v16 }
 0x10d   : > { %v503_v23 = vpop.f32.mrf.mxu0 }
 0x10e   : > { %v592_v24 = vpop.f32.mrf.mxu1 }
 0x10f   : > { %v593_v25 = vadd.f32 %v592_v24, %v503_v23  ;;  %v505_v27 = vpop.f32.mrf.mxu0 }
 0x110   : > { %v594_v28 = vpop.f32.mrf.mxu1 }
 0x111   : > { %v627_v29 = vadd.f32 %v620_v22, %v593_v25  ;;  %v595_v30 = vadd.f32 %v594_v28, %v505_v27  ;;  %v509_v31 = vpop.f32.mrf.mxu0 }
 0x112   : > { %v598_v32 = vpop.f32.mrf.mxu1 }
 0x113   : > { %635 = vst [vmem:[%s1235_s15] sm:$0xff] %v627_v29  ;;  %v628_v33 = vadd.f32 %v624_v26, %v595_v30  ;;  %v599_v34 = vadd.f32 %v598_v32, %v509_v31  ;;  %v511_v35 = vpop.f32.mrf.mxu0 }
 0x114   : > { %v600_v36 = vpop.f32.mrf.mxu1 }
 0x115   : > { %636 = vst [vmem:[%s1235_s15 + $0x8] sm:$0xff] %v628_v33  ;;  %v629_v37 = vadd.f32 %v620_v22, %v599_v34  ;;  %v601_v38 = vadd.f32 %v600_v36, %v511_v35  ;;  %v515_v39 = vpop.f32.mrf.mxu0 }
 0x116   : > { %v604_v40 = vpop.f32.mrf.mxu1 }
 0x117   : > { %637 = vst [vmem:[%s1235_s15 + $0x10] sm:$0xff] %v629_v37  ;;  %v630_v41 = vadd.f32 %v624_v26, %v601_v38  ;;  %v605_v42 = vadd.f32 %v604_v40, %v515_v39  ;;  %v517_v43 = vpop.f32.mrf.mxu0 }
 0x118   : > { %v606_v44 = vpop.f32.mrf.mxu1 }
 0x119   : > { %638 = vst [vmem:[%s1235_s15 + $0x18] sm:$0xff] %v630_v41  ;;  %v631_v45 = vadd.f32 %v620_v22, %v605_v42  ;;  %v607_v46 = vadd.f32 %v606_v44, %v517_v43  ;;  %v521_v47 = vpop.f32.mrf.mxu0 }
 0x11a   : > { %v610_v48 = vpop.f32.mrf.mxu1  ;;  %v668_v56 = vld [vmem:[%s1235_s15] sm:$0xff] (%p1013_p9) }
 0x11b   : > { %639 = vst [vmem:[%s1235_s15 + $0x20] sm:$0xff] %v631_v45  ;;  %v632_v49 = vadd.f32 %v624_v26, %v607_v46  ;;  %v611_v50 = vadd.f32 %v610_v48, %v521_v47  ;;  %v523_v51 = vpop.f32.mrf.mxu0  ;;  %669 = vst [vmem:[%s655_s8] sm:$0xff] (%p1013_p9), %v668_v56 }
 0x11c   : > { %v612_v52 = vpop.f32.mrf.mxu1  ;;  %v670_v57 = vld [vmem:[%s1235_s15 + $0x8] sm:$0xff] (%p1013_p9) }
 0x11d   : > { %640 = vst [vmem:[%s1235_s15 + $0x28] sm:$0xff] %v632_v49  ;;  %v633_v53 = vadd.f32 %v620_v22, %v611_v50  ;;  %v613_v54 = vadd.f32 %v612_v52, %v523_v51  ;;  %649 = sbr.rel (!%p1013_p9) target bundleno = 298 (0x12a), region = 120  ;;  %671 = vst [vmem:[%s655_s8 + $0x8] sm:$0xff] (%p1013_p9), %v670_v57 }
 0x11e   : > { %v672_v58 = vld [vmem:[%s1235_s15 + $0x10] sm:$0xff] (%p1013_p9) }
 0x11f   : > { %641 = vst [vmem:[%s1235_s15 + $0x30] sm:$0xff] %v633_v53  ;;  %v634_v55 = vadd.f32 %v624_v26, %v613_v54  ;;  %673 = vst [vmem:[%s655_s8 + $0x20] sm:$0xff] (%p1013_p9), %v672_v58 }
 0x120   : > { %v674_v59 = vld [vmem:[%s1235_s15 + $0x18] sm:$0xff] (%p1013_p9) }
 0x121   : > { %642 = vst [vmem:[%s1235_s15 + $0x38] sm:$0xff] %v634_v55  ;;  %675 = vst [vmem:[%s655_s8 + $0x28] sm:$0xff] (%p1013_p9), %v674_v59 }
 0x122   : > { %v676_v60 = vld [vmem:[%s1235_s15 + $0x20] sm:$0xff] }
 0x123   : > { %677 = vst [vmem:[%s655_s8 + $0x40] sm:$0xff] %v676_v60 }
 0x124   : > { %v678_v61 = vld [vmem:[%s1235_s15 + $0x28] sm:$0xff] }
 0x125   : > { %679 = vst [vmem:[%s655_s8 + $0x48] sm:$0xff] %v678_v61 }
 0x126   : > { %v680_v62 = vld [vmem:[%s1235_s15 + $0x30] sm:$0xff] }
 0x127   : > { %681 = vst [vmem:[%s655_s8 + $0x60] sm:$0xff] %v680_v62 }
 0x128   : > { %v682_v63 = vld [vmem:[%s1235_s15 + $0x38] sm:$0xff] }
 0x129   : > { %683 = vst [vmem:[%s655_s8 + $0x68] sm:$0xff] %v682_v63 }
 0x12a PF: > { %s15_s24 = sadd.s32 1, %s911_s24   ;;  %s1289_s18 = smov %s891_s19 }
 0x12b   : > { %p12_p0 = scmp.ge.s32.totalorder %s15_s24, 4   ;;  %s1290_s19 = smov %s1004_s10 }
 0x12c   : > { %s1291_s20 = smov %s899_s21  ;;  %s1292_s21 = smov %s1001_s9 }
 0x12d   : > { %s1293_s22 = smov %s907_s23  ;;  %s1294_s23 = smov %s985_s28 }
 0x12e   :  { %14 = sbr.rel (!%p12_p0) target bundleno = 4 (0x4), region = 182 }

</bundles_post_ra>
